<compile_context>
chip_gen: v7x
topology: tpu7x:2x2x1
jax: 0.10.0
libtpu: 0.0.40
codegen_flags: <defaults>
</compile_context>

<pallas_src>
import functools

import jax
import jax.numpy as jnp
from jax.experimental import pallas as pl
from jax.experimental.pallas import tpu as pltpu


def _round_up(x: int, m: int) -> int:
    return ((x + m - 1) // m) * m


def _pick_tb(batch: int, block_batch: int) -> int:
    """Batch tile: multiple of 8 sublanes, >=2 grid steps once batch > 256."""
    tb = min(block_batch, _round_up(batch, 8))
    if batch > 256:
        # v7x: ensure the "parallel" batch axis has at least 2 grid steps so
        # both TensorCores engage.  No effect on v5e/v6e (single TC).
        tb = min(tb, _round_up((batch + 1) // 2, 8))
    return max(8, tb)


def _dqn_kernel(x_ref, w1_ref, b1_ref, w2_ref, b2_ref, w3_ref, b3_ref, out_ref,
                *, compute_dtype):
    # x arrives as f32; cast to the matmul-operand dtype in-kernel (no extra
    # wrapper-side HBM pass).  Accumulate in f32 on the MXU; bias+ReLU in f32.
    x = x_ref[...].astype(compute_dtype)                               # [TB, D_in]
    h1 = jnp.dot(x, w1_ref[...], preferred_element_type=jnp.float32) + b1_ref[...]
    h1 = jnp.maximum(h1, 0.0)                                          # ReLU (f32)
    h2 = jnp.dot(h1.astype(compute_dtype), w2_ref[...],
                 preferred_element_type=jnp.float32) + b2_ref[...]
    h2 = jnp.maximum(h2, 0.0)                                          # ReLU (f32)
    q = jnp.dot(h2.astype(compute_dtype), w3_ref[...],
                preferred_element_type=jnp.float32) + b3_ref[...]
    out_ref[...] = q.astype(out_ref.dtype)                             # [TB, N_actions]


@functools.partial(jax.jit,
                   static_argnames=("block_batch", "out_dtype", "compute_dtype"))
def dqn_forward(state, params, *, block_batch: int = 512,
                out_dtype=jnp.bfloat16, compute_dtype=jnp.bfloat16):
    """Forward pass of DeepQNetwork via one fused Pallas TPU kernel.

    state:  [batch, input_dims] float32
    params: dict with w1 (in, fc1), b1 (1, fc1), w2 (fc1, fc2), b2 (1, fc2),
            w3 (fc2, n_actions), b3 (1, n_actions)  (float32)

    Matmul operands use `compute_dtype` (bf16 default; pass jnp.float32 to
    match the PyTorch f32 forward more closely).  Accumulation / bias / ReLU
    are always f32; the result is cast to `out_dtype`.
    """
    batch, d_in = state.shape
    f1 = params["w1"].shape[1]
    f2 = params["w2"].shape[1]
    n_actions = params["w3"].shape[1]

    tb = _pick_tb(batch, block_batch)
    grid = (pl.cdiv(batch, tb),)        # ragged last block is masked on writeback

    # Weights as matmul-operand dtype (tiny, one-time casts); biases stay f32.
    w1 = params["w1"].astype(compute_dtype)
    w2 = params["w2"].astype(compute_dtype)
    w3 = params["w3"].astype(compute_dtype)
    b1, b2, b3 = params["b1"], params["b2"], params["b3"]

    out_itemsize = jnp.dtype(out_dtype).itemsize
    w_itemsize = jnp.dtype(compute_dtype).itemsize

    flops = 2 * batch * (d_in * f1 + f1 * f2 + f2 * n_actions)
    bytes_accessed = (
        state.size * 4                                     # f32 activations in
        + (w1.size + w2.size + w3.size) * w_itemsize       # weights
        + (b1.size + b2.size + b3.size) * 4                # f32 biases
        + batch * n_actions * out_itemsize                 # unpadded Q-values out
    )

    # Explicit scoped-VMEM budget: double-buffered x/out tiles, resident weights
    # and biases, f32 intermediates h1/h2/q (+ bf16 copies).  v5e default scoped
    # VMEM is 16 MiB -> raise; v7x physical VMEM is 64 MiB -> clamp.
    vmem_bytes = (
        2 * tb * d_in * 4
        + 2 * tb * n_actions * out_itemsize
        + 2 * (w1.size + w2.size + w3.size) * w_itemsize
        + 2 * (b1.size + b2.size + b3.size) * 4
        + tb * (f1 + f2) * (4 + w_itemsize)
        + tb * n_actions * 4
    )
    vmem_limit = int(min(max(2 * vmem_bytes + (4 << 20), 32 << 20), 64 << 20))

    out = pl.pallas_call(
        functools.partial(_dqn_kernel, compute_dtype=compute_dtype),
        out_shape=jax.ShapeDtypeStruct((batch, n_actions), out_dtype),
        grid=grid,
        in_specs=[
            # x tile: pipelined over the batch grid (f32 in HBM, cast in-kernel).
            pl.BlockSpec((tb, d_in), lambda i: (i, 0)),
            # Weights / biases: full-array blocks, constant index_map -> resident.
            pl.BlockSpec((d_in, f1), lambda i: (0, 0)),
            pl.BlockSpec((1, f1), lambda i: (0, 0)),
            pl.BlockSpec((f1, f2), lambda i: (0, 0)),
            pl.BlockSpec((1, f2), lambda i: (0, 0)),
            pl.BlockSpec((f2, n_actions), lambda i: (0, 0)),
            pl.BlockSpec((1, n_actions), lambda i: (0, 0)),
        ],
        out_specs=pl.BlockSpec((tb, n_actions), lambda i: (i, 0)),
        compiler_params=pltpu.CompilerParams(
            dimension_semantics=("parallel",),
            vmem_limit_bytes=vmem_limit,
        ),
        cost_estimate=pl.CostEstimate(
            flops=flops, transcendentals=0, bytes_accessed=bytes_accessed
        ),
    )(state, w1, b1, w2, b2, w3, b3)

    return out


def init_dqn_params(key, input_dims, fc1_dims, fc2_dims, n_actions):
    """Deterministic init mirroring nn.Linear's U(-1/sqrt(fan_in), 1/sqrt(fan_in))."""
    def linear(key, fan_in, fan_out):
        kw, kb = jax.random.split(key)
        bound = 1.0 / jnp.sqrt(fan_in)
        # Stored as (in, out) — transposed relative to PyTorch's (out, in).
        w = jax.random.uniform(kw, (fan_in, fan_out), jnp.float32, -bound, bound)
        b = jax.random.uniform(kb, (1, fan_out), jnp.float32, -bound, bound)
        return w, b

    k1, k2, k3 = jax.random.split(key, 3)
    w1, b1 = linear(k1, input_dims, fc1_dims)
    w2, b2 = linear(k2, fc1_dims, fc2_dims)
    w3, b3 = linear(k3, fc2_dims, n_actions)
    return {"w1": w1, "b1": b1, "w2": w2, "b2": b2, "w3": w3, "b3": b3}


def reference_forward(state, p, *, out_dtype=jnp.bfloat16, compute_dtype=jnp.bfloat16):
    """Pure-JAX reference with the same operand-dtype / f32-accumulate math."""
    x = state.astype(compute_dtype)
    h1 = jnp.maximum(
        jnp.dot(x, p["w1"].astype(compute_dtype),
                preferred_element_type=jnp.float32) + p["b1"], 0.0)
    h2 = jnp.maximum(
        jnp.dot(h1.astype(compute_dtype), p["w2"].astype(compute_dtype),
                preferred_element_type=jnp.float32) + p["b2"], 0.0)
    q = jnp.dot(h2.astype(compute_dtype), p["w3"].astype(compute_dtype),
                preferred_element_type=jnp.float32) + p["b3"]
    return q.astype(out_dtype)


if __name__ == "__main__":
    # Small shapes consistent with DeepQNetwork(lr, input_dims=(16,), 32, 32, 8)
    input_dims = 16
    fc1_dims = 32
    fc2_dims = 32
    n_actions = 8

    key = jax.random.PRNGKey(0)
    k_params, k_state1, k_state2 = jax.random.split(key, 3)

    params = init_dqn_params(k_params, input_dims, fc1_dims, fc2_dims, n_actions)

    # Case 1: tiny batch, single grid step, bf16 output (default).
    state = jax.random.normal(k_state1, (8, input_dims), jnp.float32)
    q = jax.block_until_ready(dqn_forward(state, params))
    q_ref = reference_forward(state, params)
    assert q.shape == (8, n_actions)
    assert q.dtype == jnp.bfloat16
    err = float(jnp.max(jnp.abs(q.astype(jnp.float32) - q_ref.astype(jnp.float32))))
    assert jnp.allclose(q.astype(jnp.float32), q_ref.astype(jnp.float32),
                        atol=2e-2, rtol=2e-2), err

    # Case 2: ragged batch -> 2 grid steps with a masked final block, f32 output.
    state2 = jax.random.normal(k_state2, (300, input_dims), jnp.float32)
    q2 = jax.block_until_ready(dqn_forward(state2, params, out_dtype=jnp.float32))
    q2_ref = reference_forward(state2, params, out_dtype=jnp.float32)
    assert q2.shape == (300, n_actions)
    assert q2.dtype == jnp.float32
    err2 = float(jnp.max(jnp.abs(q2 - q2_ref)))
    assert jnp.allclose(q2, q2_ref, atol=2e-3, rtol=2e-3), err2

    print("KERNEL_OK")
</pallas_src>

<mosaic_0001>
module attributes {stable_mosaic.version = 11 : i64} {
  func.func @_dqn_kernel(%arg0: i32, %arg1: memref<8x16xf32, #tpu.memory_space<vmem>>, %arg2: memref<16x32xbf16, #tpu.memory_space<vmem>>, %arg3: memref<1x32xf32, #tpu.memory_space<vmem>>, %arg4: memref<32x32xbf16, #tpu.memory_space<vmem>>, %arg5: memref<1x32xf32, #tpu.memory_space<vmem>>, %arg6: memref<32x8xbf16, #tpu.memory_space<vmem>>, %arg7: memref<1x8xf32, #tpu.memory_space<vmem>>, %arg8: memref<8x8xbf16, #tpu.memory_space<vmem>>) attributes {dimension_semantics = [#tpu.dimension_semantics<parallel>], iteration_bounds = array<i64: 1>, scalar_prefetch = 0 : i64, scratch_operands = 0 : i64, tpu.core_type = #tpu.core_type<tc>, window_params = [{transform_indices = @transform_0, window_bounds = array<i64: 8, 16>}, {pipeline_mode = #tpu.pipeline_mode<synchronous>, transform_indices = @transform_1, window_bounds = array<i64: 16, 32>}, {pipeline_mode = #tpu.pipeline_mode<synchronous>, transform_indices = @transform_2, window_bounds = array<i64: 1, 32>}, {pipeline_mode = #tpu.pipeline_mode<synchronous>, transform_indices = @transform_3, window_bounds = array<i64: 32, 32>}, {pipeline_mode = #tpu.pipeline_mode<synchronous>, transform_indices = @transform_4, window_bounds = array<i64: 1, 32>}, {pipeline_mode = #tpu.pipeline_mode<synchronous>, transform_indices = @transform_5, window_bounds = array<i64: 32, 8>}, {pipeline_mode = #tpu.pipeline_mode<synchronous>, transform_indices = @transform_6, window_bounds = array<i64: 1, 8>}, {transform_indices = @transform_7, window_bounds = array<i64: 8, 8>}]} {
    %c0 = arith.constant 0 : index
    %c0_0 = arith.constant 0 : index
    %0 = vector.load %arg1[%c0, %c0_0] : memref<8x16xf32, #tpu.memory_space<vmem>>, vector<8x16xf32>
    %1 = arith.truncf %0 : vector<8x16xf32> to vector<8x16xbf16>
    %c0_1 = arith.constant 0 : index
    %c0_2 = arith.constant 0 : index
    %2 = vector.load %arg2[%c0_1, %c0_2] : memref<16x32xbf16, #tpu.memory_space<vmem>>, vector<16x32xbf16>
    %cst = arith.constant dense<0.000000e+00> : vector<8x32xf32>
    %3 = tpu.matmul %1, %2, %cst {dimension_numbers = #tpu.dot_dimension_numbers<[1], [0], [0], [1], [0, 0, 1, 1], [], []>} : vector<8x16xbf16>, vector<16x32xbf16>, vector<8x32xf32> -> vector<8x32xf32>
    %c0_3 = arith.constant 0 : index
    %c0_4 = arith.constant 0 : index
    %4 = vector.load %arg3[%c0_3, %c0_4] : memref<1x32xf32, #tpu.memory_space<vmem>>, vector<1x32xf32>
    %5 = vector.broadcast %4 : vector<1x32xf32> to vector<8x32xf32>
    %6 = arith.addf %3, %5 : vector<8x32xf32>
    %cst_5 = arith.constant 0.000000e+00 : f32
    %7 = vector.broadcast %cst_5 : f32 to vector<8x32xf32>
    %8 = arith.maximumf %6, %7 : vector<8x32xf32>
    %9 = arith.truncf %8 : vector<8x32xf32> to vector<8x32xbf16>
    %c0_6 = arith.constant 0 : index
    %c0_7 = arith.constant 0 : index
    %10 = vector.load %arg4[%c0_6, %c0_7] : memref<32x32xbf16, #tpu.memory_space<vmem>>, vector<32x32xbf16>
    %cst_8 = arith.constant dense<0.000000e+00> : vector<8x32xf32>
    %11 = tpu.matmul %9, %10, %cst_8 {dimension_numbers = #tpu.dot_dimension_numbers<[1], [0], [0], [1], [0, 0, 1, 1], [], []>} : vector<8x32xbf16>, vector<32x32xbf16>, vector<8x32xf32> -> vector<8x32xf32>
    %c0_9 = arith.constant 0 : index
    %c0_10 = arith.constant 0 : index
    %12 = vector.load %arg5[%c0_9, %c0_10] : memref<1x32xf32, #tpu.memory_space<vmem>>, vector<1x32xf32>
    %13 = vector.broadcast %12 : vector<1x32xf32> to vector<8x32xf32>
    %14 = arith.addf %11, %13 : vector<8x32xf32>
    %cst_11 = arith.constant 0.000000e+00 : f32
    %15 = vector.broadcast %cst_11 : f32 to vector<8x32xf32>
    %16 = arith.maximumf %14, %15 : vector<8x32xf32>
    %17 = arith.truncf %16 : vector<8x32xf32> to vector<8x32xbf16>
    %c0_12 = arith.constant 0 : index
    %c0_13 = arith.constant 0 : index
    %18 = vector.load %arg6[%c0_12, %c0_13] : memref<32x8xbf16, #tpu.memory_space<vmem>>, vector<32x8xbf16>
    %cst_14 = arith.constant dense<0.000000e+00> : vector<8x8xf32>
    %19 = tpu.matmul %17, %18, %cst_14 {dimension_numbers = #tpu.dot_dimension_numbers<[1], [0], [0], [1], [0, 0, 1, 1], [], []>} : vector<8x32xbf16>, vector<32x8xbf16>, vector<8x8xf32> -> vector<8x8xf32>
    %c0_15 = arith.constant 0 : index
    %c0_16 = arith.constant 0 : index
    %20 = vector.load %arg7[%c0_15, %c0_16] : memref<1x8xf32, #tpu.memory_space<vmem>>, vector<1x8xf32>
    %21 = vector.broadcast %20 : vector<1x8xf32> to vector<8x8xf32>
    %22 = arith.addf %19, %21 : vector<8x8xf32>
    %23 = arith.truncf %22 : vector<8x8xf32> to vector<8x8xbf16>
    %c0_17 = arith.constant 0 : index
    %c0_18 = arith.constant 0 : index
    %24 = vector.load %arg8[%c0_17, %c0_18] : memref<8x8xbf16, #tpu.memory_space<vmem>>, vector<8x8xbf16>
    tpu.vector_store %arg8[%c0_17, %c0_18], %23 {strides = array<i32>} : memref<8x8xbf16, #tpu.memory_space<vmem>>, vector<8x8xbf16>,
    return
  }
  func.func @transform_0(%arg0: i32) -> (i32, i32) {
    %c0_i32 = arith.constant 0 : i32
    %c0_i32_0 = arith.constant 0 : i32
    return %arg0, %c0_i32 : i32, i32
  }
  func.func @transform_1(%arg0: i32) -> (i32, i32) {
    %c0_i32 = arith.constant 0 : i32
    %c0_i32_0 = arith.constant 0 : i32
    %c0_i32_1 = arith.constant 0 : i32
    return %c0_i32, %c0_i32_0 : i32, i32
  }
  func.func @transform_2(%arg0: i32) -> (i32, i32) {
    %c0_i32 = arith.constant 0 : i32
    %c0_i32_0 = arith.constant 0 : i32
    %c0_i32_1 = arith.constant 0 : i32
    return %c0_i32, %c0_i32_0 : i32, i32
  }
  func.func @transform_3(%arg0: i32) -> (i32, i32) {
    %c0_i32 = arith.constant 0 : i32
    %c0_i32_0 = arith.constant 0 : i32
    %c0_i32_1 = arith.constant 0 : i32
    return %c0_i32, %c0_i32_0 : i32, i32
  }
  func.func @transform_4(%arg0: i32) -> (i32, i32) {
    %c0_i32 = arith.constant 0 : i32
    %c0_i32_0 = arith.constant 0 : i32
    %c0_i32_1 = arith.constant 0 : i32
    return %c0_i32, %c0_i32_0 : i32, i32
  }
  func.func @transform_5(%arg0: i32) -> (i32, i32) {
    %c0_i32 = arith.constant 0 : i32
    %c0_i32_0 = arith.constant 0 : i32
    %c0_i32_1 = arith.constant 0 : i32
    return %c0_i32, %c0_i32_0 : i32, i32
  }
  func.func @transform_6(%arg0: i32) -> (i32, i32) {
    %c0_i32 = arith.constant 0 : i32
    %c0_i32_0 = arith.constant 0 : i32
    %c0_i32_1 = arith.constant 0 : i32
    return %c0_i32, %c0_i32_0 : i32, i32
  }
  func.func @transform_7(%arg0: i32) -> (i32, i32) {
    %c0_i32 = arith.constant 0 : i32
    %c0_i32_0 = arith.constant 0 : i32
    return %arg0, %c0_i32 : i32, i32
  }
}

</mosaic_0001>

<bundles_post_ra>
// kernel: dqn_forward.1
= control target key start
LH: loop header
LB: loop body
LE: loop exit
PB: predicated region body
PF: predicated region fallthrough
CT: control target
= control target key end

     0   :  { %v316_v1 = vmov 0.0   ;;  %vm45_vm0 = vcmask 130048   ;;  %vm317_vm1 = vmmov 0   ;;  %s398_s0 = inlined_call_operand.vmem [shape: f32[8,16], index: 0, kind: input, shape index: {}]   ;;  %s399_s1 = inlined_call_operand.vmem [shape: bf16[16,32], index: 1, kind: input, shape index: {}]   ;;  %s400_s2 = inlined_call_operand.vmem [shape: f32[1,32], index: 2, kind: input, shape index: {}]   ;;  %s401_s3 = inlined_call_operand.vmem [shape: bf16[32,32], index: 3, kind: input, shape index: {}]   ;;  %s402_s4 = inlined_call_operand.vmem [shape: f32[1,32], index: 4, kind: input, shape index: {}]   ;;  %s403_s5 = inlined_call_operand.vmem [shape: bf16[32,8], index: 5, kind: input, shape index: {}]   ;;  %s404_s6 = inlined_call_operand.vmem [shape: f32[1,8], index: 6, kind: input, shape index: {}]   ;;  %s405_s7 = inlined_call_operand.hbm [shape: bf16[8,8], index: 7, kind: output, shape index: {}]  }
   0x1   :  { %v287_v0 = vld [vmem:[%s399_s1] sm:$0xff]   ;;  %262 = vmatprep.subr.bf16.mxu0 %v316_v1  ;;  %268 = vmatprep.subr.bf16.mxu1 %v316_v1 }
   0x2   :  { %v28_v2 = vld [vmem:[%s398_s0] sm:$0xff]  ;;  %263 = vmatpush3.bf16.msra.mxu0 %v287_v0  ;;  %264 = vmatprep.mubr.msk.bf16.mxu0 %vm317_vm1, %v316_v1 }
   0x3   :  { %v29_v3 = vpack.c.bf16 %v28_v2, %v28_v2  ;;  %272 = vmatprep.mubr.msk.bf16.mxu1 %vm317_vm1, %v316_v1  ;;  %276 = vmatprep.subr.bf16.mxu0 %v316_v1 }
   0x4   :  { %12 = vsyncpa [#allocation3], 0  ;;  %v288_v4 = vld [vmem:[%s401_s3] sm:$0xff]   ;;  %v289_v5 = vld [vmem:[%s401_s3 + $0x8] sm:$0xff]   ;;  %vm114_vm2 = vcmask 261120   ;;  %s318_s15 = smov [#allocation2]  }
   0x5   :  { %265 = vmatmul.mubr.msk.bf16.vlgmr.msra.gmra.mrb[0].mxu0 %vm45_vm0, %v29_v3  ;;  %269 = vmatpush3.bf16.msra.mxu1 %v288_v4  ;;  %v290_v6 = vld [vmem:[%s403_s5] sm:$0xff]   ;;  %v291_v15 = vld [vmem:[%s403_s5 + $0x8] sm:$0xff]   ;;  %s235_s5 = sshll.u32 %s318_s15, 4  ;;  %vm227_vm3 = vcmask 60416   ;;  %s236_s5 = int_to_ptr.vmem [resolvable:$true] %s235_s5 }
   0x6   :  { %280 = vmatprep.mubr.msk.bf16.mxu0 %vm317_vm1, %v316_v1  ;;  %270 = vmatprep.subr.bf16.mxu1 %v316_v1  ;;  %v243_v7 = vld [vmem:[%s400_s2] ss:$0 sm:$0xff]  ;;  %p297_p1 = scmp.lt.s32.totalorder %s236_s5, %s236_s5 }
   0x7   :  { %277 = vmatpush3.bf16.msra.mxu0 %v290_v6  ;;  %v246_v16 = vld [vmem:[%s402_s4] ss:$0 sm:$0xff]  ;;  %s292_s4 = scalar_lea.vmem %s236_s5, 64 }
   0x8   :  { %278 = vmatprep.subr.bf16.mxu0 %v316_v1  ;;  %v250_v24 = vld [vmem:[%s404_s6] ss:$0 sm:$0xff]  ;;  %p293_p0 = scmp.ne.s32.totalorder %s236_s5, %s292_s4  ;;  %p298_p2 = scmp.lt.s32.totalorder %s292_s4, %s292_s4 }
   0x9   :  { %271 = vmatpush3.bf16.msra.mxu1 %v289_v5 }
   0xa   :  { %p299_p3 = por %p298_p2, %p297_p1 }
   0xb   :  { %279 = vmatpush3.bf16.msra.mxu0 %v291_v15 }
   0xc   :  { %p300_p4 = pnand %p299_p3, %p293_p0 }
  0xd8   :  { %v83_v8 = vpop.f32.mrb[0].mxu0 }
  0xd9   :  { %v84_v9 = vadd.f32 %v243_v7, %v83_v8  ;;  %v266_v10 = vpop.f32.mrb[1].mxu0 }
  0xda   :  { %v86_v11 = vpop.f32.mrb[2].mxu0 }
  0xdb   :  { %v89_v12 = vmax.f32 %v84_v9, 0.0  ;;  %v267_v13 = vpop.f32.mrb[3].mxu0 }
  0xdd   :  { %v90_v14 = vpack.c.bf16 %v89_v12, %v89_v12 }
  0xdf   :  { %273 = vmatmul.mubr.msk.bf16.vlgmr.msra.gmra.mrb[0].mxu1 %vm114_vm2, %v90_v14 }
 0x1b2   :  { %v152_v17 = vpop.f32.mrb[0].mxu1 }
 0x1b3   :  { %v153_v18 = vadd.f32 %v246_v16, %v152_v17  ;;  %v274_v19 = vpop.f32.mrb[1].mxu1 }
 0x1b4   :  { %v155_v20 = vpop.f32.mrb[2].mxu1 }
 0x1b5   :  { %v158_v21 = vmax.f32 %v153_v18, 0.0  ;;  %v275_v22 = vpop.f32.mrb[3].mxu1 }
 0x1b7   :  { %v159_v23 = vpack.c.bf16 %v158_v21, %v158_v21 }
 0x1b9   :  { %281 = vmatmul.mubr.msk.bf16.vlgmr.msra.gmra.mrb[4].mxu0 %vm114_vm2, %v159_v23 }
 0x28c   :  { %v220_v25 = vpop.f32.mrb[4].mxu0 }
 0x28d   :  { %v221_v26 = vadd.f32 %v250_v24, %v220_v25  ;;  %v282_v27 = vpop.f32.mrb[5].mxu0 }
 0x28e   :  { %v223_v28 = vpop.f32.mrb[6].mxu0 }
 0x28f   :  { %v226_v29 = vpack.c.bf16 %v221_v26, %v221_v26  ;;  %v283_v30 = vpop.f32.mrb[7].mxu0 }
 0x291   :  { %228 = vst.msk [vmem:[#allocation2] sm:$0xf] %vm227_vm3, %v226_v29 }
 0x292   :  { %303 = shalt.err (!%p300_p4)
}
 0x293   :  { %s304_s17 = scalar_lea.hbm %s405_s7, 64 }
 0x294   :  { %p305_p5 = scmp.ne.s32.totalorder %s405_s7, %s304_s17  ;;  %p308_p6 = scmp.lt.u32.totalorder %s304_s17, %s405_s7 }
 0x296   :  { %p310_p7 = pnand %p308_p6, %p305_p5 }
 0x298   :  { %313 = shalt.err (!%p310_p7)
}
 0x299   :  { %238 = dma.vmem_to_hbm [thread:$0]  %s236_s5, 64, %s405_s7, [#allocation3]  }
 0x29a   :  { %314 = dma.done.wait [#allocation3], 64  }
 0x29b   :  { %315 = vsyncadd [#allocation3], 4294967232 }
 0x29c   :  { %242 = vsyncpa [#allocation3], 1 }

</bundles_post_ra>
